<compile_context>
chip_gen: v5e
topology: v5e:2x2
jax: 0.10.0
libtpu: 0.0.40
codegen_flags: <defaults>
</compile_context>

<pallas_src>
import functools

import jax
import jax.numpy as jnp
from jax import lax
from jax.experimental import pallas as pl
from jax.experimental.pallas import tpu as pltpu


_LANES = 128
_MAX_TILE_ROWS = 4096   # bounds lane-padded (TM,1) temporaries (~2 MiB each at 4096)


def _round_up(x, m):
    return (x + m - 1) // m * m


def _tpu_defaults():
    """(target_tile_bytes, vmem_limit_bytes, num_core_splits) per TPU generation."""
    try:
        kind = jax.devices()[0].device_kind.lower()
    except Exception:  # pragma: no cover - defensive
        kind = ""
    if "v5" in kind or "v6" in kind:
        # 128 MiB physical VMEM, single TensorCore per chip.
        return 8 * 1024 * 1024, 64 * 1024 * 1024, 1
    if "7" in kind:
        # v7x: 64 MiB VMEM per TC, 2 TCs per chip -> shard rows across cores.
        return 4 * 1024 * 1024, 48 * 1024 * 1024, 2
    # Unknown / older generation: conservative tile, compiler-default VMEM limit.
    return 2 * 1024 * 1024, None, 1


def _lm_criterion_kernel(inp_ref, tgt_ref, mask_ref, out_ref, acc_num, acc_den,
                         *, n_rows, block_rows, blocks_per_split):
    c = pl.program_id(0)   # core-split index ("parallel")
    i = pl.program_id(1)   # row-tile index within the split ("arbitrary")

    @pl.when(i == 0)
    def _():
        acc_num[...] = jnp.zeros_like(acc_num)
        acc_den[...] = jnp.zeros_like(acc_den)

    # Logical (unclamped) rows covered by this tile.  The index_map clamps the
    # DMA so reads stay in bounds; garbage past n_rows is neutralized below.
    row_start = (c * blocks_per_split + i) * block_rows
    row = row_start + lax.broadcasted_iota(jnp.int32, (block_rows, 1), 0)
    valid = row < n_rows                                        # (TM, 1) bool

    x = inp_ref[...]                                            # (TM, V) native dtype
    # Clamp target to -1 on invalid rows: it can never match a column, so no
    # tile-wide `& valid` is needed on the (TM, V) select.
    tgt = jnp.where(valid, tgt_ref[...], -1)                    # (TM, 1) i32
    m = jnp.where(valid, mask_ref[...], 0.0)                    # (TM, 1) f32

    col = lax.broadcasted_iota(jnp.int32, x.shape, 1)           # (TM, V)
    picked = jnp.where(col == tgt, x, jnp.zeros((), x.dtype))   # (TM, V) native dtype
    # Each row has at most one non-zero element, so the native-dtype row sum is
    # exact; only the narrow result is upcast.
    gathered = jnp.sum(picked, axis=1, keepdims=True).astype(jnp.float32)   # (TM, 1)

    # NOTE: matches PyTorch reference: a -inf log-prob at a masked (m==0)
    # position yields NaN (reference does -gather * mask too).
    acc_num[...] += jnp.sum(gathered * m, keepdims=True)
    acc_den[...] += jnp.sum(m, keepdims=True)

    @pl.when(i == pl.num_programs(1) - 1)
    def _():
        lane = lax.broadcasted_iota(jnp.int32, (1, _LANES), 1)
        out_ref[...] = jnp.where(lane == 0, -acc_num[...],
                                 jnp.where(lane == 1, acc_den[...], 0.0))


@functools.partial(jax.jit, static_argnums=(3, 4, 5))
def _lm_criterion(inp, target, mask, target_tile_bytes, vmem_limit_bytes, num_splits):
    B, T, V = inp.shape
    N = B * T

    x = inp.reshape(N, V)                          # native dtype, no copy/upcast
    tgt = target.reshape(N, 1).astype(jnp.int32)   # tiny
    m = mask.reshape(N, 1).astype(jnp.float32)     # tiny

    # Tile rows: sized by the byte budget (rows a multiple of 16), capped only by
    # the problem size and _MAX_TILE_ROWS (lane-padded (TM,1) temporaries).
    itemsize = x.dtype.itemsize
    tm = target_tile_bytes // max(V * itemsize, 1)
    tm = max(16, (tm // 16) * 16)
    tm = min(tm, _MAX_TILE_ROWS)
    tm = min(tm, max(16, _round_up(N, 16)))

    n_blocks = pl.cdiv(N, tm)
    blocks_per_split = pl.cdiv(n_blocks, num_splits)
    last_block = n_blocks - 1

    def row_map(c, i):
        # Clamp so the DMA never targets a fully out-of-bounds block; the kernel's
        # row-validity predicate (based on the *unclamped* index) discards repeats.
        return (jnp.minimum(c * blocks_per_split + i, last_block), 0)

    kernel = functools.partial(
        _lm_criterion_kernel,
        n_rows=N, block_rows=tm, blocks_per_split=blocks_per_split)

    out = pl.pallas_call(
        kernel,
        out_shape=jax.ShapeDtypeStruct((1, num_splits * _LANES), jnp.float32),
        grid_spec=pltpu.PrefetchScalarGridSpec(
            num_scalar_prefetch=0,
            grid=(num_splits, blocks_per_split),
            in_specs=[
                pl.BlockSpec((tm, V), row_map),
                pl.BlockSpec((tm, 1), row_map),
                pl.BlockSpec((tm, 1), row_map),
            ],
            out_specs=pl.BlockSpec((1, _LANES), lambda c, i: (0, c)),
            scratch_shapes=[
                pltpu.VMEM((1, 1), jnp.float32),   # numerator partial
                pltpu.VMEM((1, 1), jnp.float32),   # denominator partial
            ],
        ),
        compiler_params=pltpu.CompilerParams(
            dimension_semantics=("parallel", "arbitrary"),
            vmem_limit_bytes=vmem_limit_bytes,
        ),
    )(x, tgt, m)

    parts = out.reshape(num_splits, _LANES)
    num = jnp.sum(parts[:, 0])
    den = jnp.sum(parts[:, 1])
    # NOTE: den == 0 yields NaN/inf, matching the PyTorch reference behaviour.
    return num / den


def language_model_criterion(inp, target, mask):
    tile_bytes, vmem_limit, num_splits = _tpu_defaults()
    return _lm_criterion(inp, target, mask, tile_bytes, vmem_limit, num_splits)


def _reference(inp, target, mask):
    B, T, V = inp.shape
    x = inp.reshape(-1, V).astype(jnp.float32)
    t = target.reshape(-1).astype(jnp.int32)
    m = mask.reshape(-1).astype(jnp.float32)
    gathered = jnp.take_along_axis(x, t[:, None], axis=1)[:, 0]
    return jnp.sum(-gathered * m) / jnp.sum(m)


if __name__ == "__main__":
    key = jax.random.PRNGKey(0)
    k1, k2, k3 = jax.random.split(key, 3)

    # Small shapes: batch=2, seq=8, vocab=32.
    B, T, V = 2, 8, 32
    logits = jax.random.normal(k1, (B, T, V), dtype=jnp.float32)
    log_probs = jax.nn.log_softmax(logits, axis=-1)            # "input" (log-probabilities)
    target = jax.random.randint(k2, (B, T), 0, V, dtype=jnp.int32)
    lengths = jnp.array([T, T - 3], dtype=jnp.int32)           # per-sequence padding mask
    mask = (jnp.arange(T)[None, :] < lengths[:, None]).astype(jnp.float32)

    loss = jax.block_until_ready(language_model_criterion(log_probs, target, mask))
    ref = _reference(log_probs, target, mask)
    assert jnp.allclose(loss, ref, atol=1e-5, rtol=1e-5), (loss, ref)

    # bf16 input streamed and gathered natively (no upcast copy anywhere).
    lp_bf16 = log_probs.astype(jnp.bfloat16)
    loss_bf16 = jax.block_until_ready(language_model_criterion(lp_bf16, target, mask))
    ref_bf16 = _reference(lp_bf16.astype(jnp.float32), target, mask)
    assert jnp.allclose(loss_bf16, ref_bf16, atol=1e-5, rtol=1e-5), (loss_bf16, ref_bf16)

    # Row count not a multiple of the tile: exercises the in-kernel validity
    # handling (clamped target / zeroed mask) on padded partial blocks.
    B2, T2 = 3, 7
    logits2 = jax.random.normal(k3, (B2, T2, V), dtype=jnp.float32)
    lp2 = jax.nn.log_softmax(logits2, axis=-1)
    tgt2 = jax.random.randint(jax.random.PRNGKey(1), (B2, T2), 0, V, dtype=jnp.int32)
    mask2 = (jax.random.uniform(jax.random.PRNGKey(2), (B2, T2)) > 0.3).astype(jnp.float32)
    loss2 = jax.block_until_ready(language_model_criterion(lp2, tgt2, mask2))
    ref2 = _reference(lp2, tgt2, mask2)
    assert jnp.allclose(loss2, ref2, atol=1e-5, rtol=1e-5), (loss2, ref2)

    print("KERNEL_OK")
</pallas_src>

<mosaic_0001>
module attributes {stable_mosaic.version = 11 : i64} {
  func.func @_lm_criterion_kernel(%arg0: i32, %arg1: i32, %arg2: memref<16x32xf32, #tpu.memory_space<vmem>>, %arg3: memref<16x1xi32, #tpu.memory_space<vmem>>, %arg4: memref<16x1xf32, #tpu.memory_space<vmem>>, %arg5: memref<1x128xf32, #tpu.memory_space<vmem>>, %arg6: memref<1x1xf32, #tpu.memory_space<vmem>>, %arg7: memref<1x1xf32, #tpu.memory_space<vmem>>) attributes {dimension_semantics = [#tpu.dimension_semantics<parallel>, #tpu.dimension_semantics<arbitrary>], iteration_bounds = array<i64: 1, 1>, scalar_prefetch = 0 : i64, scratch_operands = 2 : i64, tpu.core_type = #tpu.core_type<tc>, window_params = [{transform_indices = @transform_0, window_bounds = array<i64: 16, 32>}, {transform_indices = @transform_1, window_bounds = array<i64: 16, 1>}, {transform_indices = @transform_2, window_bounds = array<i64: 16, 1>}, {transform_indices = @transform_3, window_bounds = array<i64: 1, 128>}]} {
    %c0_i32 = arith.constant 0 : i32
    %0 = arith.cmpi eq, %arg1, %c0_i32 : i32
    %1 = arith.extui %0 : i1 to i32
    %c0_i32_0 = arith.constant 0 : i32
    %2 = arith.cmpi ne, %1, %c0_i32_0 : i32
    scf.if %2 {
      %cst_21 = arith.constant 0.000000e+00 : f32
      %45 = vector.broadcast %cst_21 : f32 to vector<1x1xf32>
      %c0_22 = arith.constant 0 : index
      %c0_23 = arith.constant 0 : index
      %46 = vector.load %arg6[%c0_22, %c0_23] : memref<1x1xf32, #tpu.memory_space<vmem>>, vector<1x1xf32>
      tpu.vector_store %arg6[%c0_22, %c0_23], %45 {strides = array<i32>} : memref<1x1xf32, #tpu.memory_space<vmem>>, vector<1x1xf32>,
      %cst_24 = arith.constant 0.000000e+00 : f32
      %47 = vector.broadcast %cst_24 : f32 to vector<1x1xf32>
      %c0_25 = arith.constant 0 : index
      %c0_26 = arith.constant 0 : index
      %48 = vector.load %arg7[%c0_25, %c0_26] : memref<1x1xf32, #tpu.memory_space<vmem>>, vector<1x1xf32>
      tpu.vector_store %arg7[%c0_25, %c0_26], %47 {strides = array<i32>} : memref<1x1xf32, #tpu.memory_space<vmem>>, vector<1x1xf32>,
    } else {
    }
    %c1_i32 = arith.constant 1 : i32
    %3 = arith.muli %arg0, %c1_i32 : i32
    %4 = arith.addi %3, %arg1 : i32
    %c16_i32 = arith.constant 16 : i32
    %5 = arith.muli %4, %c16_i32 : i32
    %6 = tpu.iota {dimensions = array<i32: 0>} : vector<16x1xi32>
    %7 = vector.broadcast %5 : i32 to vector<16x1xi32>
    %8 = arith.addi %7, %6 : vector<16x1xi32>
    %c16_i32_1 = arith.constant 16 : i32
    %9 = vector.broadcast %c16_i32_1 : i32 to vector<16x1xi32>
    %10 = arith.cmpi slt, %8, %9 : vector<16x1xi32>
    %c0 = arith.constant 0 : index
    %c0_2 = arith.constant 0 : index
    %11 = vector.load %arg2[%c0, %c0_2] : memref<16x32xf32, #tpu.memory_space<vmem>>, vector<16x32xf32>
    %c0_3 = arith.constant 0 : index
    %c0_4 = arith.constant 0 : index
    %12 = vector.load %arg3[%c0_3, %c0_4] : memref<16x1xi32, #tpu.memory_space<vmem>>, vector<16x1xi32>
    %c-1_i32 = arith.constant -1 : i32
    %13 = vector.broadcast %c-1_i32 : i32 to vector<16x1xi32>
    %14 = arith.select %10, %12, %13 : vector<16x1xi1>, vector<16x1xi32>
    %c0_5 = arith.constant 0 : index
    %c0_6 = arith.constant 0 : index
    %15 = vector.load %arg4[%c0_5, %c0_6] : memref<16x1xf32, #tpu.memory_space<vmem>>, vector<16x1xf32>
    %cst = arith.constant 0.000000e+00 : f32
    %16 = vector.broadcast %cst : f32 to vector<16x1xf32>
    %17 = arith.select %10, %15, %16 : vector<16x1xi1>, vector<16x1xf32>
    %18 = tpu.iota {dimensions = array<i32: 1>} : vector<16x32xi32>
    %19 = vector.broadcast %14 : vector<16x1xi32> to vector<16x32xi32>
    %20 = arith.cmpi eq, %18, %19 : vector<16x32xi32>
    %cst_7 = arith.constant 0.000000e+00 : f32
    %21 = vector.broadcast %cst_7 : f32 to vector<16x32xf32>
    %22 = arith.select %20, %11, %21 : vector<16x32xi1>, vector<16x32xf32>
    %cst_8 = arith.constant dense<0.000000e+00> : vector<16xf32>
    %23 = vector.multi_reduction <add>, %22, %cst_8 [1] : vector<16x32xf32> to vector<16xf32>
    %24 = vector.shape_cast %23 : vector<16xf32> to vector<16x1xf32>
    %c0_9 = arith.constant 0 : index
    %c0_10 = arith.constant 0 : index
    %25 = vector.load %arg6[%c0_9, %c0_10] : memref<1x1xf32, #tpu.memory_space<vmem>>, vector<1x1xf32>
    %26 = arith.mulf %24, %17 : vector<16x1xf32>
    %27 = vector.shape_cast %26 : vector<16x1xf32> to vector<1x16x1xf32>
    %cst_11 = arith.constant dense<0.000000e+00> : vector<1xf32>
    %28 = vector.multi_reduction <add>, %27, %cst_11 [1, 2] : vector<1x16x1xf32> to vector<1xf32>
    %29 = vector.shape_cast %28 : vector<1xf32> to vector<1x1x1xf32>
    %30 = vector.extract %29[0, 0, 0] : f32 from vector<1x1x1xf32>
    %31 = vector.broadcast %30 : f32 to vector<1x1xf32>
    %32 = arith.addf %25, %31 : vector<1x1xf32>
    %c0_12 = arith.constant 0 : index
    %c0_13 = arith.constant 0 : index
    %33 = vector.load %arg6[%c0_12, %c0_13] : memref<1x1xf32, #tpu.memory_space<vmem>>, vector<1x1xf32>
    tpu.vector_store %arg6[%c0_12, %c0_13], %32 {strides = array<i32>} : memref<1x1xf32, #tpu.memory_space<vmem>>, vector<1x1xf32>,
    %c0_14 = arith.constant 0 : index
    %c0_15 = arith.constant 0 : index
    %34 = vector.load %arg7[%c0_14, %c0_15] : memref<1x1xf32, #tpu.memory_space<vmem>>, vector<1x1xf32>
    %35 = vector.shape_cast %17 : vector<16x1xf32> to vector<1x16x1xf32>
    %cst_16 = arith.constant dense<0.000000e+00> : vector<1xf32>
    %36 = vector.multi_reduction <add>, %35, %cst_16 [1, 2] : vector<1x16x1xf32> to vector<1xf32>
    %37 = vector.shape_cast %36 : vector<1xf32> to vector<1x1x1xf32>
    %38 = vector.extract %37[0, 0, 0] : f32 from vector<1x1x1xf32>
    %39 = vector.broadcast %38 : f32 to vector<1x1xf32>
    %40 = arith.addf %34, %39 : vector<1x1xf32>
    %c0_17 = arith.constant 0 : index
    %c0_18 = arith.constant 0 : index
    %41 = vector.load %arg7[%c0_17, %c0_18] : memref<1x1xf32, #tpu.memory_space<vmem>>, vector<1x1xf32>
    tpu.vector_store %arg7[%c0_17, %c0_18], %40 {strides = array<i32>} : memref<1x1xf32, #tpu.memory_space<vmem>>, vector<1x1xf32>,
    %c0_i32_19 = arith.constant 0 : i32
    %42 = arith.cmpi eq, %arg1, %c0_i32_19 : i32
    %43 = arith.extui %42 : i1 to i32
    %c0_i32_20 = arith.constant 0 : i32
    %44 = arith.cmpi ne, %43, %c0_i32_20 : i32
    scf.if %44 {
      %45 = tpu.iota {dimensions = array<i32: 1>} : vector<1x128xi32>
      %c0_i32_21 = arith.constant 0 : i32
      %46 = vector.broadcast %c0_i32_21 : i32 to vector<1x128xi32>
      %47 = arith.cmpi eq, %45, %46 : vector<1x128xi32>
      %c0_22 = arith.constant 0 : index
      %c0_23 = arith.constant 0 : index
      %48 = vector.load %arg6[%c0_22, %c0_23] : memref<1x1xf32, #tpu.memory_space<vmem>>, vector<1x1xf32>
      %cst_24 = arith.constant 0.000000e+00 : f32
      %49 = vector.broadcast %cst_24 : f32 to vector<1x1xf32>
      %50 = arith.subf %49, %48 : vector<1x1xf32>
      %c1_i32_25 = arith.constant 1 : i32
      %51 = vector.broadcast %c1_i32_25 : i32 to vector<1x128xi32>
      %52 = arith.cmpi eq, %45, %51 : vector<1x128xi32>
      %c0_26 = arith.constant 0 : index
      %c0_27 = arith.constant 0 : index
      %53 = vector.load %arg7[%c0_26, %c0_27] : memref<1x1xf32, #tpu.memory_space<vmem>>, vector<1x1xf32>
      %cst_28 = arith.constant 0.000000e+00 : f32
      %54 = vector.shape_cast %53 : vector<1x1xf32> to vector<1x1xf32>
      %55 = vector.broadcast %54 : vector<1x1xf32> to vector<1x128xf32>
      %56 = vector.broadcast %cst_28 : f32 to vector<1x128xf32>
      %57 = arith.select %52, %55, %56 : vector<1x128xi1>, vector<1x128xf32>
      %58 = vector.shape_cast %50 : vector<1x1xf32> to vector<1x1xf32>
      %59 = vector.broadcast %58 : vector<1x1xf32> to vector<1x128xf32>
      %60 = arith.select %47, %59, %57 : vector<1x128xi1>, vector<1x128xf32>
      %c0_29 = arith.constant 0 : index
      %c0_30 = arith.constant 0 : index
      %61 = vector.load %arg5[%c0_29, %c0_30] : memref<1x128xf32, #tpu.memory_space<vmem>>, vector<1x128xf32>
      tpu.vector_store %arg5[%c0_29, %c0_30], %60 {strides = array<i32>} : memref<1x128xf32, #tpu.memory_space<vmem>>, vector<1x128xf32>,
    } else {
    }
    return
  }
  func.func @transform_0(%arg0: i32, %arg1: i32) -> (i32, i32) {
    %c1_i32 = arith.constant 1 : i32
    %0 = arith.muli %arg0, %c1_i32 : i32
    %1 = arith.addi %0, %arg1 : i32
    %c0_i32 = arith.constant 0 : i32
    %2 = arith.minsi %1, %c0_i32 : i32
    %c0_i32_0 = arith.constant 0 : i32
    %c0_i32_1 = arith.constant 0 : i32
    return %2, %c0_i32_0 : i32, i32
  }
  func.func @transform_1(%arg0: i32, %arg1: i32) -> (i32, i32) {
    %c1_i32 = arith.constant 1 : i32
    %0 = arith.muli %arg0, %c1_i32 : i32
    %1 = arith.addi %0, %arg1 : i32
    %c0_i32 = arith.constant 0 : i32
    %2 = arith.minsi %1, %c0_i32 : i32
    %c0_i32_0 = arith.constant 0 : i32
    %c0_i32_1 = arith.constant 0 : i32
    return %2, %c0_i32_0 : i32, i32
  }
  func.func @transform_2(%arg0: i32, %arg1: i32) -> (i32, i32) {
    %c1_i32 = arith.constant 1 : i32
    %0 = arith.muli %arg0, %c1_i32 : i32
    %1 = arith.addi %0, %arg1 : i32
    %c0_i32 = arith.constant 0 : i32
    %2 = arith.minsi %1, %c0_i32 : i32
    %c0_i32_0 = arith.constant 0 : i32
    %c0_i32_1 = arith.constant 0 : i32
    return %2, %c0_i32_0 : i32, i32
  }
  func.func @transform_3(%arg0: i32, %arg1: i32) -> (i32, i32) {
    %c0_i32 = arith.constant 0 : i32
    %c0_i32_0 = arith.constant 0 : i32
    return %c0_i32, %arg0 : i32, i32
  }
}

</mosaic_0001>

<bundles_post_ra>
// kernel: _lm_criterion.1
= control target key start
LH: loop header
LB: loop body
LE: loop exit
PB: predicated region body
PF: predicated region fallthrough
CT: control target
= control target key end

     0   :  { %v245_v0 = vmov 0   ;;  %v137_v3 = vlaneseq  ;;  %vm149_vm0 = vcmask 261120   ;;  %vm159_vm3 = vcmask 7168   ;;  %s298_s1 = inlined_call_operand.vmem [shape: s32[16,1], index: 1, kind: input, shape index: {}]   ;;  %s299_s0 = inlined_call_operand.vmem [shape: f32[16,32], index: 0, kind: input, shape index: {}]   ;;  %s300_s2 = inlined_call_operand.vmem [shape: f32[16,1], index: 2, kind: input, shape index: {}]   ;;  %s301_s3 = inlined_call_operand.vmem [shape: f32[1,128], index: 3, kind: output, shape index: {}]  }
   0x1   :  { %243 = vset.pattern.permute.xlu0 %v245_v0  ;;  %v129_v1 = vld [vmem:[%s298_s1] sm:$0xff]  ;;  %244 = vset.pattern.permute.xlu1 %v245_v0  ;;  %v130_v2 = vld [vmem:[%s298_s1 + $0x8] sm:$0xff]  ;;  %vm114_vm4 = vcmask 0   ;;  %v246_v25 = vmov 0.0  }
   0x2   :  { %140 = vperm.xlu0 %243, %v129_v1   ;;  %v273_v4 = vand.u32 127, %v137_v3  ;;  %v127_v5 = vld [vmem:[%s299_s0] sm:$0xff]  ;;  %v128_v9 = vld [vmem:[%s299_s0 + $0x8] sm:$0xff]  ;;  %115 = vst.msk [vmem:[#allocation2] sm:$0x1] %vm114_vm4, %v246_v25 }
   0x3   :  { %v133_v14 = vld [vmem:[%s300_s2] sm:$0xff]  ;;  %v134_v15 = vld [vmem:[%s300_s2 + $0x8] sm:$0xff]  ;;  %116 = vst.msk [vmem:[#allocation3] sm:$0x1] %vm114_vm4, %v246_v25 }
   0x4   :  { %v177_v22 = vsel %vm159_vm3, %v133_v14, 0.0  ;;  %v178_v23 = vsel %vm159_vm3, %v134_v15, 0.0  ;;  %vm198_vm5 = vcmp.eq.s32.totalorder %v273_v4, 1  ;;  %vm195_vm6 = vcmp.eq.s32.totalorder %v273_v4, 0 }
   0x5   :  { %v179_v24 = vadd.f32 %v178_v23, %v177_v22 }
   0x9   :  { %v156_v40 = vld [vmem:[#allocation2] sm:$0x1] }
   0xa   :  { %143 = vperm.xlu0 %243, %v130_v2   ;;  %v176_v43 = vld [vmem:[#allocation3] sm:$0x1] }
  0x74   :  { %v141_v6 = vpop.permute.xlu0 %140 }
  0x75   :  { %vm145_vm1 = vcmp.eq.s32.totalorder %v273_v4, %v141_v6 }
  0x76   :  { %v147_v7 = vsel %vm145_vm1, %v127_v5, 0.0 }
  0x77   :  { %v150_v8 = vsel %vm149_vm0, %v147_v7, 0.0 }
  0x78   :  { %151 = vadd.xlane.f32.xlu1 %v150_v8 }
  0x7c   :  { %v144_v10 = vpop.permute.xlu0 %143 }
  0x7d   :  { %vm146_vm2 = vcmp.eq.s32.totalorder %v273_v4, %v144_v10 }
  0x7e   :  { %v148_v11 = vsel %vm146_vm2, %v128_v9, 0.0 }
  0x7f   :  { %v153_v12 = vsel %vm149_vm0, %v148_v11, 0.0 }
  0x80   :  { %154 = vadd.xlane.f32.xlu1 %v153_v12 }
  0xeb   :  { %v152_v13 = vpop.xlane.xlu1 %151 }
  0xec   :  { %v157_v16 = vmul.f32 %v152_v13, %v133_v14 }
  0xee   :  { %v160_v19 = vsel %vm159_vm3, %v157_v16, 0.0 }
  0xf3   :  { %v155_v17 = vpop.xlane.xlu1 %154 }
  0xf4   :  { %v158_v18 = vmul.f32 %v155_v17, %v134_v15 }
  0xf6   :  { %v161_v20 = vsel %vm159_vm3, %v158_v18, 0.0 }
  0xf7   :  { %v162_v21 = vadd.f32 %v161_v20, %v160_v19 }
  0xf9   :  { %163 = vadd.xlane.f32.xlu2 %v162_v21 }
 0x101   :  { %180 = vadd.xlane.f32.xlu2 %v179_v24 }
 0x16c   :  { %v164_v26 = vpop.xlane.xlu2 %163 }
 0x16d   :  { %v165_v27 = vrot.slane %v164_v26, 4 }
 0x16f   :  { %v166_v28 = vadd.f32 %v165_v27, %v164_v26 }
 0x171   :  { %v167_v29 = vrot.slane %v166_v28, 2 }
 0x173   :  { %v168_v30 = vadd.f32 %v167_v29, %v166_v28 }
 0x174   :  { %v181_v31 = vpop.xlane.xlu2 %180 }
 0x175   :  { %v182_v32 = vrot.slane %v181_v31, 4  ;;  %v169_v33 = vrot.slane %v168_v30, 1 }
 0x177   :  { %v183_v34 = vadd.f32 %v182_v32, %v181_v31  ;;  %v170_v35 = vadd.f32 %v169_v33, %v168_v30 }
 0x179   :  { %v184_v36 = vrot.slane %v183_v34, 2  ;;  %237 = vpush %v170_v35 }
 0x17b   :  { %v185_v37 = vadd.f32 %v184_v36, %v183_v34 }
 0x17d   :  { %v186_v38 = vrot.slane %v185_v37, 1 }
 0x17f   :  { %v187_v39 = vadd.f32 %v186_v38, %v185_v37 }
 0x181   :  { %239 = vpush %v187_v39 }
 0x1aa   :  { %s238_s0 = spop %237 }
 0x1ab   :  { %v172_v41 = vstv %s238_s0 }
 0x1ac   :  { %v173_v42 = vadd.f32 %v172_v41, %v156_v40 }
 0x1ae   :  { %175 = vst.msk [vmem:[#allocation2] sm:$0x1] %vm114_vm4, %v173_v42 }
 0x1b2   :  { %s240_s2 = spop %239 }
 0x1b3   :  { %v189_v44 = vstv %s240_s2 }
 0x1b4   :  { %v190_v45 = vadd.f32 %v189_v44, %v176_v43 }
 0x1b5   :  { %v196_v46 = vld [vmem:[#allocation2] sm:$0x1] }
 0x1b6   :  { %191 = vst.msk [vmem:[#allocation3] sm:$0x1] %vm114_vm4, %v190_v45  ;;  %v197_v47 = vsub.f32 0.0, %v196_v46 }
 0x1b8   :  { %209 = vperm.xlu1 %244, %v197_v47  }
 0x1bd   :  { %v199_v48 = vld [vmem:[#allocation3] sm:$0x1] }
 0x1be   :  { %202 = vperm.xlu0 %243, %v199_v48  }
 0x22a   :  { %v210_v49 = vpop.permute.xlu1 %209 }
 0x22b   :  { %v212_v52 = vperm.slane %v210_v49, 0 }
 0x230   :  { %v203_v50 = vpop.permute.xlu0 %202 }
 0x231   :  { %v205_v51 = vperm.slane %v203_v50, 0 }
 0x233   :  { %v206_v53 = vsel %vm198_vm5, %v205_v51, 0.0 }
 0x234   :  { %v213_v54 = vsel %vm195_vm6, %v212_v52, %v206_v53 }
 0x235   :  { %214 = vst [vmem:[%s301_s3] sm:$0x1] %v213_v54 }

</bundles_post_ra>
